<compile_context>
chip_gen: v5e
topology: v5e:2x2
jax: 0.10.0
libtpu: 0.0.40
codegen_flags: <defaults>
</compile_context>

<pallas_src>
import functools

import jax
import jax.numpy as jnp
from jax.experimental import pallas as pl
from jax.experimental.pallas import tpu as pltpu


def _scale_kernel(w_ref, x_ref, o_ref, *, native_math):
    # w_ref: (1, 1) float32 scalar in SMEM; x_ref/o_ref: (tile_r, cols) tiles in VMEM.
    w = w_ref[0, 0]
    x = x_ref[...]
    if native_math and o_ref.dtype == x.dtype:
        # Native-dtype multiply (bf16 VALU on v6e/v7x); halves vreg footprint vs f32.
        o_ref[...] = x * w.astype(x.dtype)
    else:
        # f32 upcast-multiply-downcast matches PyTorch f32-parameter promotion semantics.
        o_ref[...] = (x.astype(jnp.float32) * w).astype(o_ref.dtype)


def _device_tuning():
    """Return (target_block_bytes, vmem_limit_bytes, native_bf16) per TPU generation."""
    try:
        kind = jax.devices()[0].device_kind.lower()
    except Exception:
        kind = ""
    newer = ("v6" in kind) or ("v7" in kind)
    if newer:
        return 4 << 20, 48 << 20, True   # bigger blocks, raised scoped-VMEM limit
    return 2 << 20, None, False          # v5e: 16 MiB default scoped VMEM -> stay small


def learnable_scale(x, weight, *, max_tile_rows=None, donate=False):
    """Apply out = weight * x with a Pallas TPU kernel.

    x: arbitrary-shaped array (e.g. NCHW). weight: shape (1,) parameter (f32).
    max_tile_rows: optional cap on tile rows (used to exercise ragged blocks in tests).
    donate: alias the input buffer to the output (requires matching dtypes).
    """
    orig_shape = x.shape
    out_dtype = jnp.result_type(x.dtype, weight.dtype)

    total = x.size
    if total == 0 or x.ndim == 0:
        return (weight.reshape(()).astype(jnp.float32)
                * x.astype(jnp.float32)).astype(out_dtype)

    target_block_bytes, vmem_limit, native_bf16 = _device_tuning()

    # ---- lane-dense 2D view: cols is ALWAYS a multiple of 128 ----
    LANE = 128
    cols = None
    for c in (2048, 1024, 512, 256, 128):
        if total % c == 0:
            cols = c
            break
    if cols is None:
        cols = LANE
        padded_total = ((total + LANE - 1) // LANE) * LANE
    else:
        padded_total = total
    pad = padded_total - total

    x_flat = x.reshape(-1)
    if pad:
        x_flat = jnp.pad(x_flat, (0, pad))     # one-time pad beats masked partial stores
    rows = padded_total // cols
    x2d = x_flat.reshape(rows, cols)

    # ---- tile sizing ----
    itemsize_in = jnp.dtype(x.dtype).itemsize
    itemsize_out = jnp.dtype(out_dtype).itemsize
    itemsize = max(itemsize_in, itemsize_out)
    # dtype-aware sublane floor: 8 rows (f32) / 16 (bf16/f16) / 32 (int8/fp8).
    sub = 8 * max(1, 4 // min(itemsize_in, itemsize_out))

    tile_r = max(sub, target_block_bytes // (cols * itemsize))
    if max_tile_rows is not None:
        tile_r = min(tile_r, max(1, max_tile_rows))

    if tile_r >= rows:
        if rows >= 2 * sub:
            # Split into >=2 row-blocks so both v7x TensorCores stream and the pipeline
            # overlaps DMA with compute even for mid-sized arrays.
            half = pl.cdiv(rows, 2)
            tile_r = ((half + sub - 1) // sub) * sub
        else:
            tile_r = rows                      # single full-extent block
    else:
        tile_r = max(sub, (tile_r // sub) * sub)
    tile_r = min(tile_r, rows)

    grid = (pl.cdiv(rows, tile_r),)
    w_smem = weight.reshape(1, 1).astype(jnp.float32)

    native_math = native_bf16 and jnp.dtype(x.dtype) == jnp.dtype(out_dtype)
    kernel = functools.partial(_scale_kernel, native_math=native_math)

    alias = {1: 0} if (donate and jnp.dtype(x.dtype) == jnp.dtype(out_dtype)) else {}

    out2d = pl.pallas_call(
        kernel,
        out_shape=jax.ShapeDtypeStruct((rows, cols), out_dtype),
        grid_spec=pltpu.PrefetchScalarGridSpec(
            num_scalar_prefetch=0,
            grid=grid,
            in_specs=[
                pl.BlockSpec(memory_space=pltpu.SMEM),            # scalar weight (f32)
                pl.BlockSpec((tile_r, cols), lambda i: (i, 0)),   # lane-dense x tile
            ],
            out_specs=pl.BlockSpec((tile_r, cols), lambda i: (i, 0)),
        ),
        compiler_params=pltpu.CompilerParams(
            dimension_semantics=("parallel",),        # shard row-blocks across TCs
            vmem_limit_bytes=vmem_limit,
        ),
        input_output_aliases=alias,
    )(w_smem, x2d)

    out_flat = out2d.reshape(-1)
    if pad:
        out_flat = out_flat[:total]
    return out_flat.reshape(orig_shape)


if __name__ == "__main__":
    key = jax.random.PRNGKey(0)

    # Parameter init: torch.Tensor(1).fill_(init) with init=1.0 — use a non-trivial scale.
    init = 1.0
    weight = jnp.full((1,), init, dtype=jnp.float32) * 0.75

    # Test 1: typical small NCHW activation; 2*4*16*16 = 2048 -> lane-dense (1, 2048).
    x = jax.random.normal(key, (2, 4, 16, 16), dtype=jnp.float32)
    out = jax.block_until_ready(learnable_scale(x, weight))
    ref = weight[0] * x
    assert out.shape == x.shape and out.dtype == x.dtype
    assert jnp.allclose(out, ref, atol=1e-6, rtol=1e-6)

    # Test 2: ragged last row-block (rows=15, tile rows capped to 8 -> grid of 2,
    # masked tail) to validate Pallas pad-read / mask-write behaviour.
    x2 = jax.random.normal(jax.random.PRNGKey(1), (10, 3, 8, 16), dtype=jnp.float32)
    out2 = jax.block_until_ready(learnable_scale(x2, weight, max_tile_rows=8))
    ref2 = weight[0] * x2
    assert out2.shape == x2.shape and out2.dtype == x2.dtype
    assert jnp.allclose(out2, ref2, atol=1e-6, rtol=1e-6)

    # Test 3: awkward element count (945, not divisible by 128) -> flat pad-to-128 path,
    # still lane-dense (8, 128) block.
    x3 = jax.random.normal(jax.random.PRNGKey(2), (3, 5, 7, 9), dtype=jnp.float32)
    out3 = jax.block_until_ready(learnable_scale(x3, weight))
    ref3 = weight[0] * x3
    assert out3.shape == x3.shape and out3.dtype == x3.dtype
    assert jnp.allclose(out3, ref3, atol=1e-6, rtol=1e-6)

    # Test 4: bf16 in/out -> native-dtype multiply on v6e/v7x (f32 path elsewhere).
    w_bf = weight.astype(jnp.bfloat16)
    x4 = jax.random.normal(jax.random.PRNGKey(3), (2, 4, 8, 16), dtype=jnp.bfloat16)
    out4 = jax.block_until_ready(learnable_scale(x4, w_bf))
    ref4 = w_bf[0] * x4
    assert out4.shape == x4.shape and out4.dtype == jnp.bfloat16
    assert jnp.allclose(out4.astype(jnp.float32), ref4.astype(jnp.float32),
                        atol=1e-2, rtol=1e-2)

    # Test 5: mid-sized array (0.5 MiB) -> auto-split into >=2 row-blocks for megacore.
    x5 = jax.random.normal(jax.random.PRNGKey(4), (16, 8, 32, 32), dtype=jnp.float32)
    out5 = jax.block_until_ready(learnable_scale(x5, weight))
    ref5 = weight[0] * x5
    assert out5.shape == x5.shape and out5.dtype == x5.dtype
    assert jnp.allclose(out5, ref5, atol=1e-6, rtol=1e-6)

    print("KERNEL_OK")
</pallas_src>

<mosaic_0001>
module attributes {stable_mosaic.version = 11 : i64} {
  func.func @_scale_kernel(%arg0: i32, %arg1: memref<1x1xf32, #tpu.memory_space<smem>>, %arg2: memref<1x2048xf32, #tpu.memory_space<vmem>>, %arg3: memref<1x2048xf32, #tpu.memory_space<vmem>>) attributes {dimension_semantics = [#tpu.dimension_semantics<parallel>], iteration_bounds = array<i64: 1>, scalar_prefetch = 0 : i64, scratch_operands = 0 : i64, tpu.core_type = #tpu.core_type<tc>, window_params = [{transform_indices = @transform_0, window_bounds = array<i64: 1, 1>}, {transform_indices = @transform_1, window_bounds = array<i64: 1, 2048>}, {transform_indices = @transform_2, window_bounds = array<i64: 1, 2048>}]} {
    %c0 = arith.constant 0 : index
    %c0_0 = arith.constant 0 : index
    %0 = memref.load %arg1[%c0, %c0_0] : memref<1x1xf32, #tpu.memory_space<smem>>
    %c0_1 = arith.constant 0 : index
    %c0_2 = arith.constant 0 : index
    %1 = vector.load %arg2[%c0_1, %c0_2] : memref<1x2048xf32, #tpu.memory_space<vmem>>, vector<1x2048xf32>
    %2 = vector.broadcast %0 : f32 to vector<1x2048xf32>
    %3 = arith.mulf %1, %2 : vector<1x2048xf32>
    %c0_3 = arith.constant 0 : index
    %c0_4 = arith.constant 0 : index
    %4 = vector.load %arg3[%c0_3, %c0_4] : memref<1x2048xf32, #tpu.memory_space<vmem>>, vector<1x2048xf32>
    tpu.vector_store %arg3[%c0_3, %c0_4], %3 {strides = array<i32>} : memref<1x2048xf32, #tpu.memory_space<vmem>>, vector<1x2048xf32>,
    return
  }
  func.func @transform_0(%arg0: i32) -> (i32, i32) {
    %c0_i32 = arith.constant 0 : i32
    %c0_i32_0 = arith.constant 0 : i32
    %c0_i32_1 = arith.constant 0 : i32
    return %c0_i32, %c0_i32_0 : i32, i32
  }
  func.func @transform_1(%arg0: i32) -> (i32, i32) {
    %c0_i32 = arith.constant 0 : i32
    %c0_i32_0 = arith.constant 0 : i32
    return %arg0, %c0_i32 : i32, i32
  }
  func.func @transform_2(%arg0: i32) -> (i32, i32) {
    %c0_i32 = arith.constant 0 : i32
    %c0_i32_0 = arith.constant 0 : i32
    return %arg0, %c0_i32 : i32, i32
  }
}

</mosaic_0001>

<bundles_post_ra>
// kernel: tpu_custom_call.1
= control target key start
LH: loop header
LB: loop body
LE: loop exit
PB: predicated region body
PF: predicated region fallthrough
CT: control target
= control target key end

     0   :  { %8 = vsyncpa [#allocation4], 0  ;;  %s132_s0 = inlined_call_operand.<no memory space> [shape: f32[1,1], index: 0, kind: input, shape index: {}]   ;;  %s133_s1 = inlined_call_operand.hbm [shape: f32[1,2048], index: 1, kind: input, shape index: {}]   ;;  %s134_s2 = inlined_call_operand.hbm [shape: f32[1,2048], index: 2, kind: output, shape index: {}]  }
   0x1   :  { %9 = vsyncpa [#allocation5], 0  ;;  %s17_s11 = sshll.u32 %s133_s1, 4  ;;  %s106_s12 = smov [#allocation3]   ;;  %s18_s11 = int_to_ptr.hbm [resolvable:$true] %s17_s11 }
   0x2   :  { %s19_s13 = sshll.u32 %s106_s12, 4  ;;  %s20_s13 = int_to_ptr.vmem [resolvable:$true] %s19_s13 }
   0x3   :  { %22 = dma.hbm_to_vmem [thread:$0]  %s18_s11, 256, %s20_s13, [#allocation4]  }
   0x4   :  { %102 = dma.done.wait [#allocation4], 256  }
   0x5   :  { %103 = vsyncadd [#allocation4], 4294967040  ;;  %v30_v0 = vstv %s132_s0  ;;  %s107_s16 = smov [#allocation6]   ;;  %s42_s20 = sshll.u32 %s134_s2, 4  ;;  %v28_v1 = vld [vmem:[#allocation3] sm:$0xff]  ;;  %v29_v2 = vld [vmem:[#allocation3 + $0x8] sm:$0xff]  ;;  %s43_s20 = int_to_ptr.hbm [resolvable:$true] %s42_s20 }
   0x6   :  { %s40_s17 = sshll.u32 %s107_s16, 4  ;;  %v31_v3 = vmul.f32 %v30_v0, %v28_v1  ;;  %v32_v4 = vmul.f32 %v30_v0, %v29_v2  ;;  %s41_s17 = int_to_ptr.vmem [resolvable:$true] %s40_s17 }
   0x8   :  { %33 = vst [vmem:[#allocation6] sm:$0xff] %v31_v3 }
   0x9   :  { %34 = vst [vmem:[#allocation6 + $0x8] sm:$0xff] %v32_v4 }
   0xa   :  { %45 = dma.vmem_to_hbm [thread:$0]  %s41_s17, 256, %s43_s20, [#allocation5]  }
   0xb   :  { %104 = dma.done.wait [#allocation5], 256  }
   0xc   :  { %105 = vsyncadd [#allocation5], 4294967040 }
   0xd   :  { %50 = vsyncpa [#allocation4], 1 }
   0xe   :  { %51 = vsyncpa [#allocation5], 1 }

</bundles_post_ra>
